<compile_context>
chip_gen: v5e
topology: v5e:2x2
jax: 0.10.0
libtpu: 0.0.40
codegen_flags: <defaults>
</compile_context>

<pallas_src>
import jax
import jax.numpy as jnp
from jax.experimental import pallas as pl
from jax.experimental.pallas import tpu as pltpu


# Target number of OUTPUT elements per block (per grid step).  512K f32 is a
# 2 MiB output slab + 4 MiB (two-branch) input slab per step; double-buffered,
# plus the small lane-padded mask buffers, this stays well under the explicit
# VMEM limit below on every TPU generation.
_TARGET_BLOCK_ELEMS = 512 * 1024

# Above this many output elements, always split the token axis into at least
# two grid steps so both v7x TensorCores get work (no-op on v5e/v6e).
_SPLIT_THRESHOLD_ELEMS = 64 * 1024

_VMEM_LIMIT_BYTES = 48 * 1024 * 1024


def _parallel_select_kernel(x_ref, m_ref, o_ref):
    # x_ref: (2, TR, C)  -- both parallel branches of this token tile.
    # m_ref: (2, TR, 1)  -- per-token mask values for both branches.
    # o_ref: (TR, C)
    #
    # Compare in the mask's own dtype; the branch is indexed along the leading,
    # non-tiled dim so the where is an aligned VPU select.
    cond = m_ref[0] >= m_ref[1]                        # (TR, 1) bool
    o_ref[...] = jnp.where(cond, x_ref[0], x_ref[1])   # lane-broadcast over C


def _round_up(v, m):
    return -(-v // m) * m


def token_argmax(x, mask, mask_threshold=None, *, block_rows=None):
    """x: (2, B, N, C) stacked parallel inputs; mask: (2, B, N).

    Returns [new_x, new_x] with new_x of shape (B, N, C), matching the PyTorch
    module's parallel-list output (mask_threshold is unused, as in the module).
    """
    del mask_threshold  # unused in the reference forward
    two, B, N, C = x.shape
    assert two == 2 and mask.shape == (2, B, N)

    T = B * N
    total_out = T * C

    # Free reshapes of the contiguous inputs -- no HBM copies in the wrapper.
    x_tok = x.reshape(2, T, C)
    m_tok = mask.reshape(2, T, 1)

    if block_rows is None:
        # Token rows per block.  Using max(C, 128) in the denominator also
        # bounds the lane-padded (TR, 128) VMEM footprint of the mask buffers
        # when C < 128 (HBM traffic for the mask is unaffected).
        rows = max(8, (_TARGET_BLOCK_ELEMS // max(C, 128)) // 8 * 8)
        if total_out > _SPLIT_THRESHOLD_ELEMS:
            # Guarantee >= 2 grid steps so both v7x TensorCores are used.
            rows = min(rows, max(8, _round_up(_round_up(T, 2) // 2, 8)))
    else:
        rows = max(8, _round_up(block_rows, 8))

    tr = T if T <= rows else rows          # full extent or a multiple of 8
    grid = (pl.cdiv(T, tr),)

    new_x_flat = pl.pallas_call(
        _parallel_select_kernel,
        out_shape=jax.ShapeDtypeStruct((T, C), x.dtype),
        grid=grid,
        in_specs=[
            pl.BlockSpec((2, tr, C), lambda t: (0, t, 0)),  # both branches
            pl.BlockSpec((2, tr, 1), lambda t: (0, t, 0)),  # per-token mask
        ],
        out_specs=pl.BlockSpec((tr, C), lambda t: (t, 0)),
        compiler_params=pltpu.CompilerParams(
            dimension_semantics=("parallel",),
            vmem_limit_bytes=_VMEM_LIMIT_BYTES,
        ),
    )(x_tok, m_tok)

    new_x = new_x_flat.reshape(B, N, C)
    return [new_x, new_x]


def _reference(x, mask):
    cond = (mask[0] >= mask[1])[..., None]
    new_x = jnp.where(cond, x[0], x[1])
    return [new_x, new_x]


if __name__ == "__main__":
    key = jax.random.PRNGKey(0)
    k1, k2, k3, k4 = jax.random.split(key, 4)

    # Small shapes consistent with the module's forward.
    B, N, C = 2, 8, 32
    x = jax.random.normal(k1, (2, B, N, C), dtype=jnp.float32)
    mask = jax.random.uniform(k2, (2, B, N), dtype=jnp.float32)

    out = token_argmax(x, mask, mask_threshold=0.02)
    out = [jax.block_until_ready(o) for o in out]
    ref = _reference(x, mask)
    assert out[0].shape == (B, N, C) and out[1].shape == (B, N, C)
    assert jnp.allclose(out[0], ref[0]) and jnp.allclose(out[1], ref[1])
    assert jnp.array_equal(out[0], out[1])

    # Ragged-tail case: token count not a multiple of the block rows, so the
    # final partial block exercises padded reads / clipped output writeback.
    B2, N2, C2 = 2, 10, 32            # T = 20 tokens, block_rows = 8 -> 3 blocks
    x2 = jax.random.normal(k3, (2, B2, N2, C2), dtype=jnp.float32)
    mask2 = jax.random.uniform(k4, (2, B2, N2), dtype=jnp.float32)
    out2 = token_argmax(x2, mask2, block_rows=8)
    out2 = [jax.block_until_ready(o) for o in out2]
    ref2 = _reference(x2, mask2)
    assert jnp.allclose(out2[0], ref2[0]) and jnp.allclose(out2[1], ref2[1])

    print("KERNEL_OK")
</pallas_src>

<mosaic_0001>
module attributes {stable_mosaic.version = 11 : i64} {
  func.func @_parallel_select_kernel(%arg0: i32, %arg1: memref<2x16x32xf32, #tpu.memory_space<vmem>>, %arg2: memref<2x16x1xf32, #tpu.memory_space<vmem>>, %arg3: memref<16x32xf32, #tpu.memory_space<vmem>>) attributes {dimension_semantics = [#tpu.dimension_semantics<parallel>], iteration_bounds = array<i64: 1>, scalar_prefetch = 0 : i64, scratch_operands = 0 : i64, tpu.core_type = #tpu.core_type<tc>, window_params = [{transform_indices = @transform_0, window_bounds = array<i64: 2, 16, 32>}, {transform_indices = @transform_1, window_bounds = array<i64: 2, 16, 1>}, {transform_indices = @transform_2, window_bounds = array<i64: 16, 32>}]} {
    %c0 = arith.constant 0 : index
    %c0_0 = arith.constant 0 : index
    %c0_1 = arith.constant 0 : index
    %0 = vector.load %arg2[%c0, %c0_0, %c0_1] : memref<2x16x1xf32, #tpu.memory_space<vmem>>, vector<1x16x1xf32>
    %1 = vector.shape_cast %0 : vector<1x16x1xf32> to vector<16x1xf32>
    %c1 = arith.constant 1 : index
    %c0_2 = arith.constant 0 : index
    %c0_3 = arith.constant 0 : index
    %2 = vector.load %arg2[%c1, %c0_2, %c0_3] : memref<2x16x1xf32, #tpu.memory_space<vmem>>, vector<1x16x1xf32>
    %3 = vector.shape_cast %2 : vector<1x16x1xf32> to vector<16x1xf32>
    %4 = arith.cmpf oge, %1, %3 : vector<16x1xf32>
    %c0_4 = arith.constant 0 : index
    %c0_5 = arith.constant 0 : index
    %c0_6 = arith.constant 0 : index
    %5 = vector.load %arg1[%c0_4, %c0_5, %c0_6] : memref<2x16x32xf32, #tpu.memory_space<vmem>>, vector<1x16x32xf32>
    %6 = vector.shape_cast %5 : vector<1x16x32xf32> to vector<16x32xf32>
    %c1_7 = arith.constant 1 : index
    %c0_8 = arith.constant 0 : index
    %c0_9 = arith.constant 0 : index
    %7 = vector.load %arg1[%c1_7, %c0_8, %c0_9] : memref<2x16x32xf32, #tpu.memory_space<vmem>>, vector<1x16x32xf32>
    %8 = vector.shape_cast %7 : vector<1x16x32xf32> to vector<16x32xf32>
    %9 = vector.shape_cast %4 : vector<16x1xi1> to vector<16x1xi1>
    %10 = vector.broadcast %9 : vector<16x1xi1> to vector<16x32xi1>
    %11 = arith.select %10, %6, %8 : vector<16x32xi1>, vector<16x32xf32>
    %c0_10 = arith.constant 0 : index
    %c0_11 = arith.constant 0 : index
    %12 = vector.load %arg3[%c0_10, %c0_11] : memref<16x32xf32, #tpu.memory_space<vmem>>, vector<16x32xf32>
    tpu.vector_store %arg3[%c0_10, %c0_11], %11 {strides = array<i32>} : memref<16x32xf32, #tpu.memory_space<vmem>>, vector<16x32xf32>,
    return
  }
  func.func @transform_0(%arg0: i32) -> (i32, i32, i32) {
    %c0_i32 = arith.constant 0 : i32
    %c0_i32_0 = arith.constant 0 : i32
    %c0_i32_1 = arith.constant 0 : i32
    return %c0_i32, %arg0, %c0_i32_0 : i32, i32, i32
  }
  func.func @transform_1(%arg0: i32) -> (i32, i32, i32) {
    %c0_i32 = arith.constant 0 : i32
    %c0_i32_0 = arith.constant 0 : i32
    %c0_i32_1 = arith.constant 0 : i32
    return %c0_i32, %arg0, %c0_i32_0 : i32, i32, i32
  }
  func.func @transform_2(%arg0: i32) -> (i32, i32) {
    %c0_i32 = arith.constant 0 : i32
    %c0_i32_0 = arith.constant 0 : i32
    return %arg0, %c0_i32 : i32, i32
  }
}

</mosaic_0001>

<bundles_post_ra>
// kernel: tpu_custom_call.1
= control target key start
LH: loop header
LB: loop body
LE: loop exit
PB: predicated region body
PF: predicated region fallthrough
CT: control target
= control target key end

     0   :  { %v92_v2 = vmov 0   ;;  %s138_s0 = inlined_call_operand.vmem [shape: f32[2,16,32], index: 0, kind: input, shape index: {}]   ;;  %s139_s1 = inlined_call_operand.vmem [shape: f32[2,16,1], index: 1, kind: input, shape index: {}]   ;;  %s140_s2 = inlined_call_operand.hbm [shape: f32[16,32], index: 2, kind: output, shape index: {}]  }
   0x1   :  { %v12_v0 = vld [vmem:[%s139_s1] sm:$0xff]  ;;  %v57_v1 = vld [vmem:[%s139_s1 + $0x10] sm:$0xff]  ;;  %65 = vset.pattern.permute.xlu0 %v92_v2  ;;  %v13_v4 = vld [vmem:[%s139_s1 + $0x8] sm:$0xff] }
   0x2   :  { %vm17_vm0 = vcmp.ge.f32.partialorder %v12_v0, %v57_v1  ;;  %v58_v5 = vld [vmem:[%s139_s1 + $0x18] sm:$0xff] }
   0x3   :  { %v24_v3 = vsel %vm17_vm0, 1, %v92_v2 }
   0x4   :  { %7 = vsyncpa [#allocation3], 0  ;;  %27 = vperm.xlu0 %65, %v24_v3   ;;  %vm18_vm1 = vcmp.ge.f32.partialorder %v13_v4, %v58_v5  ;;  %v19_v7 = vld [vmem:[%s138_s0] sm:$0xff]  ;;  %v59_v8 = vld [vmem:[%s138_s0 + $0x10] sm:$0xff]  ;;  %vm36_vm2 = vcmask 261120   ;;  %s93_s21 = smov [#allocation2]  }
   0x5   :  { %v25_v6 = vsel %vm18_vm1, 1, %v92_v2  ;;  %s43_s1 = sshll.u32 %s93_s21, 4  ;;  %s45_s24 = sshll.u32 %s140_s2, 4  ;;  %v20_v11 = vld [vmem:[%s138_s0 + $0x8] sm:$0xff]  ;;  %v60_v12 = vld [vmem:[%s138_s0 + $0x18] sm:$0xff]  ;;  %s44_s1 = int_to_ptr.vmem [resolvable:$true] %s43_s1  ;;  %s46_s24 = int_to_ptr.hbm [resolvable:$true] %s45_s24 }
   0x6   :  { %s94_s29 = smov 128   ;;  %s95_s30 = smov 8  }
   0xc   :  { %30 = vperm.xlu0 %65, %v25_v6  }
  0x76   :  { %v28_v9 = vpop.permute.xlu0 %27 }
  0x77   :  { %vm32_vm3 = vcmp.eq.s32.totalorder %v28_v9, 1 }
  0x78   :  { %v34_v10 = vsel %vm32_vm3, %v19_v7, %v59_v8 }
  0x79   :  { %37 = vst.msk [vmem:[#allocation2] sm:$0xff] %vm36_vm2, %v34_v10 }
  0x7e   :  { %v31_v13 = vpop.permute.xlu0 %30 }
  0x7f   :  { %vm33_vm4 = vcmp.eq.s32.totalorder %v31_v13, 1 }
  0x80   :  { %v35_v14 = vsel %vm33_vm4, %v20_v11, %v60_v12 }
  0x81   :  { %38 = vst.msk [vmem:[#allocation2 + $0x8] sm:$0xff] %vm36_vm2, %v35_v14 }
  0x82   :  { %51 = dma.vmem_to_hbm [thread:$0]  %s44_s1, 256, %s46_s24, [#allocation3], %s94_s29, %s94_s29, %s95_s30  }
  0x83   :  { %90 = dma.done.wait [#allocation3], 256  }
  0x84   :  { %91 = vsyncadd [#allocation3], 4294967040 }
  0x85   :  { %56 = vsyncpa [#allocation3], 1 }

</bundles_post_ra>
